<compile_context>
chip_gen: v6e
topology: v6e:2x2x1
jax: 0.10.0
libtpu: 0.0.40
codegen_flags: <defaults>
</compile_context>

<pallas_src>
import functools

import jax
import jax.numpy as jnp
from jax import lax
from jax.experimental import pallas as pl
from jax.experimental.pallas import tpu as pltpu

_NEG = -1.0e30   # sentinel for suppressed / below-threshold / padded candidates
_PAD = -1.0e9    # score padding value (never exceeds any real score)


def _retina_nms_kernel(sc_ref, reg_ref, anc_ref, out_ref, *,
                       image_w, image_h, min_score_threshold,
                       nms_threshold, max_detection_num):
    """Per-image box decode + threshold + greedy NMS.

    sc_ref:  [1, 2, K]  row 0 = best class score, row 1 = class id (float)
    reg_ref: [1, 4, K]  tx, ty, tw, th  (candidates on lanes)
    anc_ref: [1, 4, K]  x1, y1, x2, y2  (candidates on lanes)
    out_ref: [1, 8, M_pad] rows 0=x1 1=y1 2=-x2 3=-y2 4=score 5=class 6=x2 7=y2
    """
    K = sc_ref.shape[2]
    M_pad = out_ref.shape[2]
    M = max_detection_num

    scores = sc_ref[0, 0:1, :]                                  # [1, K]
    classes = sc_ref[0, 1:2, :]                                 # [1, K]

    # ---- snap tx,ty,tw,th regression to x1,y1,x2,y2 (pair-vectorized) ----
    a_tl = anc_ref[0, 0:2, :]                                   # [2, K] x1,y1
    a_br = anc_ref[0, 2:4, :]                                   # [2, K] x2,y2
    a_wh = a_br - a_tl
    a_ctr = a_tl + 0.5 * a_wh
    t_xy = reg_ref[0, 0:2, :] * jnp.float32(0.1)
    t_wh = reg_ref[0, 2:4, :] * jnp.float32(0.2)
    p_wh = jnp.exp(t_wh) * a_wh
    p_ctr = t_xy * a_wh + a_ctr
    tl = p_ctr - 0.5 * p_wh                                     # [2, K] x1,y1
    br = p_ctr + 0.5 * p_wh                                     # [2, K] x2,y2
    # torch: .int() truncates toward zero, clamp x1/y1 to min 0 and x2/y2 to
    # max (w-1, h-1), later .float().  (float->int32 of overflowing exp values
    # is implementation-defined, same as torch .int().)
    tl = jnp.maximum(tl.astype(jnp.int32), 0).astype(jnp.float32)
    row2 = lax.broadcasted_iota(jnp.int32, br.shape, 0)
    br_lim = jnp.where(row2 == 0, jnp.int32(image_w - 1), jnp.int32(image_h - 1))
    br = jnp.minimum(br.astype(jnp.int32), br_lim).astype(jnp.float32)

    wh_box = br - tl                                            # [2, K]
    areas = wh_box[0:1, :] * wh_box[1:2, :]                     # [1, K]

    # Packed, sublane-dense candidate slab (computed once):
    # rows: 0=x1 1=y1 2=-x2 3=-y2 4=score 5=class 6=x2 7=y2
    feat = jnp.concatenate([tl, -br, scores, classes, br], axis=0)   # [8, K]
    corners = feat[0:4, :]                                      # [4, K]

    lane_k = lax.broadcasted_iota(jnp.int32, (1, K), 1)
    lane_m = lax.broadcasted_iota(jnp.int32, (1, M_pad), 1)

    thr = jnp.float32(min_score_threshold)
    nms_thr = jnp.float32(nms_threshold)

    # Candidates below the score threshold (incl. lane padding) get a sentinel.
    w0 = jnp.where(scores > thr, scores, jnp.float32(_NEG))     # [1, K]
    # Output accumulator carried in vregs; -1 init matches torch defaults.
    out0 = jnp.full((8, M_pad), -1.0, dtype=jnp.float32)

    def body(i, carry):
        w, out_acc = carry
        m = jnp.max(w, axis=1, keepdims=True)                   # [1, 1]
        valid = m > thr                                         # [1, 1]
        idx = jnp.min(jnp.where(w == m, lane_k, K),
                      axis=1, keepdims=True)                    # [1, 1]
        onehot = lane_k == idx                                  # [1, K]

        # One fused masked cross-lane reduction picks every field at once.
        picked = jnp.sum(jnp.where(onehot, feat, jnp.float32(0.0)),
                         axis=1, keepdims=True)                 # [8, 1]

        sel = (lane_m == i) & valid                             # [1, M_pad]
        out_acc = jnp.where(sel, picked, out_acc)               # [8, M_pad]

        # IoU of picked box against all candidates; the (x1,y1,-x2,-y2)
        # packing makes both overlap corners a single [4, K] maximum.
        ov = jnp.maximum(corners, picked[0:4])                  # [4, K]
        wh = jnp.maximum(-(ov[0:2, :] + ov[2:4, :]), 0.0)       # [2, K]
        inter = wh[0:1, :] * wh[1:2, :]                         # [1, K]
        t_area = ((picked[6:7] - picked[0:1]) *
                  (picked[7:8] - picked[1:2]))                  # [1, 1]
        union = jnp.maximum(t_area + areas - inter,
                            jnp.float32(0.0001))                # [1, K]
        # iou >= thr  <=>  inter >= thr * union (union > 0): no divide needed.
        suppress = inter >= nms_thr * union                     # [1, K]

        kill = (suppress | onehot) & valid
        new_w = jnp.where(kill, jnp.float32(_NEG), w)
        return new_w, out_acc

    _, out_final = lax.fori_loop(0, M, body, (w0, out0))
    out_ref[0] = out_final                                      # single dense store


def retina_decoder(cls_heads, reg_heads, batch_anchors, *,
                   image_w, image_h, top_n=1000, min_score_threshold=0.05,
                   nms_threshold=0.5, max_detection_num=100):
    """Pallas implementation of RetinaDecoder.forward.

    cls_heads:     list of [B, A_l, num_classes]
    reg_heads:     list of [B, A_l, 4]
    batch_anchors: list of [B, A_l, 4]
    returns: scores [B, M], classes [B, M], boxes [B, M, 4] (float32)
    """
    filt_scores, filt_classes, filt_reg, filt_anc = [], [], [], []
    for cls_h, reg_h, anc_h in zip(cls_heads, reg_heads, batch_anchors):
        cls_h = cls_h.astype(jnp.float32)
        reg_h = reg_h.astype(jnp.float32)
        anc_h = anc_h.astype(jnp.float32)
        # torch.max(per_level_cls_head, dim=2): fused minor-axis reduction,
        # reads cls once from HBM, no transpose, no [C, N] iota.
        scores = jnp.max(cls_h, axis=2)                              # [B, A_l]
        score_classes = jnp.argmax(cls_h, axis=2).astype(jnp.float32)  # [B, A_l]
        if scores.shape[1] >= top_n:                                 # reference top_n branch
            scores, idx = lax.top_k(scores, top_n)
            score_classes = jnp.take_along_axis(score_classes, idx, axis=1)
            reg_h = jnp.take_along_axis(reg_h, idx[..., None], axis=1)
            anc_h = jnp.take_along_axis(anc_h, idx[..., None], axis=1)
        filt_scores.append(scores)
        filt_classes.append(score_classes)
        filt_reg.append(reg_h)
        filt_anc.append(anc_h)

    scores = jnp.concatenate(filt_scores, axis=1)        # [B, K]
    classes = jnp.concatenate(filt_classes, axis=1)      # [B, K]
    reg = jnp.concatenate(filt_reg, axis=1)              # [B, K, 4]
    anc = jnp.concatenate(filt_anc, axis=1)              # [B, K, 4]

    B, Kc = scores.shape
    M = int(max_detection_num)

    def _round_up(v, k):
        return (v + k - 1) // k * k

    K_pad = _round_up(max(Kc, 128), 128)     # lane-dense candidate axis
    M_pad = _round_up(max(M, 1), 128)        # lane-dense output axis

    pad = K_pad - Kc
    if pad:
        scores = jnp.pad(scores, ((0, 0), (0, pad)), constant_values=_PAD)
        classes = jnp.pad(classes, ((0, 0), (0, pad)), constant_values=-1.0)
        reg = jnp.pad(reg, ((0, 0), (0, pad), (0, 0)))
        anc = jnp.pad(anc, ((0, 0), (0, pad), (0, 0)))

    # Candidates on the LANE axis; only small [B, K, 4] arrays get transposed.
    sc_cls = jnp.stack([scores, classes], axis=1)        # [B, 2, K_pad]
    reg_t = jnp.transpose(reg, (0, 2, 1))                # [B, 4, K_pad]
    anc_t = jnp.transpose(anc, (0, 2, 1))                # [B, 4, K_pad]

    kernel = functools.partial(
        _retina_nms_kernel,
        image_w=int(image_w), image_h=int(image_h),
        min_score_threshold=float(min_score_threshold),
        nms_threshold=float(nms_threshold),
        max_detection_num=M)

    # Explicit VMEM budget: double-buffered inputs + packed working slabs +
    # output, with headroom; capped well below v7x's 64 MiB physical VMEM.
    vmem_needed = (4 * K_pad * 10 * 2       # inputs (2+4+4 rows), double-buffered
                   + 4 * K_pad * 24         # feat/corners/areas/w working slabs
                   + 4 * 8 * M_pad * 4      # output + accumulator copies
                   + (8 << 20))             # headroom
    vmem_limit = int(min(max(vmem_needed, 16 << 20), 56 << 20))

    out = pl.pallas_call(
        kernel,
        out_shape=jax.ShapeDtypeStruct((B, 8, M_pad), jnp.float32),
        grid_spec=pltpu.PrefetchScalarGridSpec(
            num_scalar_prefetch=0,
            grid=(B,),
            in_specs=[
                pl.BlockSpec((1, 2, K_pad), lambda b: (b, 0, 0)),
                pl.BlockSpec((1, 4, K_pad), lambda b: (b, 0, 0)),
                pl.BlockSpec((1, 4, K_pad), lambda b: (b, 0, 0)),
            ],
            out_specs=pl.BlockSpec((1, 8, M_pad), lambda b: (b, 0, 0)),
        ),
        compiler_params=pltpu.CompilerParams(
            dimension_semantics=("parallel",),   # batches independent (v7x 2 TCs)
            vmem_limit_bytes=vmem_limit),
    )(sc_cls, reg_t, anc_t)

    out = out[:, :, :M]                                   # drop lane padding of M
    batch_scores = out[:, 4, :]                           # [B, M]
    batch_classes = out[:, 5, :]                          # [B, M]
    batch_pred_bboxes = jnp.stack(
        [out[:, 0, :], out[:, 1, :], out[:, 6, :], out[:, 7, :]], axis=2)  # [B, M, 4]
    return batch_scores, batch_classes, batch_pred_bboxes


if __name__ == "__main__":
    key = jax.random.PRNGKey(0)
    B = 2
    num_classes = 8
    image_w = image_h = 128
    level_anchor_counts = [64, 32]   # two FPN levels
    max_det = 16

    keys = jax.random.split(key, 3 * len(level_anchor_counts))
    cls_heads, reg_heads, batch_anchors = [], [], []
    ki = 0
    for A in level_anchor_counts:
        cls_heads.append(jax.random.uniform(
            keys[ki], (B, A, num_classes), dtype=jnp.float32)); ki += 1
        reg_heads.append(0.5 * jax.random.normal(
            keys[ki], (B, A, 4), dtype=jnp.float32)); ki += 1
        k1, k2 = jax.random.split(keys[ki]); ki += 1
        xy1 = jax.random.uniform(k1, (B, A, 2), dtype=jnp.float32,
                                 minval=0.0, maxval=image_w - 40.0)
        wh = jax.random.uniform(k2, (B, A, 2), dtype=jnp.float32,
                                minval=16.0, maxval=40.0)
        batch_anchors.append(jnp.concatenate([xy1, xy1 + wh], axis=2))

    scores, classes, bboxes = retina_decoder(
        cls_heads, reg_heads, batch_anchors,
        image_w=image_w, image_h=image_h,
        top_n=1000, min_score_threshold=0.05, nms_threshold=0.5,
        max_detection_num=max_det)

    jax.block_until_ready((scores, classes, bboxes))

    assert scores.shape == (B, max_det)
    assert classes.shape == (B, max_det)
    assert bboxes.shape == (B, max_det, 4)
    s_np = jax.device_get(scores)
    c_np = jax.device_get(classes)
    b_np = jax.device_get(bboxes)
    for b_i in range(B):
        # kept (positive) scores must be non-increasing (greedy NMS order)
        v = s_np[b_i][s_np[b_i] > 0]
        if v.size > 1:
            assert (v[:-1] >= v[1:]).all()
        # kept detections must have valid class ids and boxes inside the image
        kept = s_np[b_i] > 0
        if kept.any():
            assert (c_np[b_i][kept] >= 0).all()
            assert (c_np[b_i][kept] < num_classes).all()
            assert (b_np[b_i][kept] >= 0).all()

    print("KERNEL_OK")
</pallas_src>

<mosaic_0001>
module attributes {stable_mosaic.version = 11 : i64} {
  func.func @_retina_nms_kernel(%arg0: i32, %arg1: memref<1x2x128xf32, #tpu.memory_space<vmem>>, %arg2: memref<1x4x128xf32, #tpu.memory_space<vmem>>, %arg3: memref<1x4x128xf32, #tpu.memory_space<vmem>>, %arg4: memref<1x8x128xf32, #tpu.memory_space<vmem>>) attributes {dimension_semantics = [#tpu.dimension_semantics<parallel>], iteration_bounds = array<i64: 2>, scalar_prefetch = 0 : i64, scratch_operands = 0 : i64, tpu.core_type = #tpu.core_type<tc>, window_params = [{transform_indices = @transform_0, window_bounds = array<i64: 1, 2, 128>}, {transform_indices = @transform_1, window_bounds = array<i64: 1, 4, 128>}, {transform_indices = @transform_2, window_bounds = array<i64: 1, 4, 128>}, {transform_indices = @transform_3, window_bounds = array<i64: 1, 8, 128>}]} {
    %c0 = arith.constant 0 : index
    %c0_0 = arith.constant 0 : index
    %c0_1 = arith.constant 0 : index
    %0 = vector.load %arg1[%c0, %c0_0, %c0_1] : memref<1x2x128xf32, #tpu.memory_space<vmem>>, vector<1x1x128xf32>
    %1 = vector.shape_cast %0 : vector<1x1x128xf32> to vector<1x128xf32>
    %c0_2 = arith.constant 0 : index
    %c1 = arith.constant 1 : index
    %c0_3 = arith.constant 0 : index
    %2 = vector.load %arg1[%c0_2, %c1, %c0_3] : memref<1x2x128xf32, #tpu.memory_space<vmem>>, vector<1x1x128xf32>
    %3 = vector.shape_cast %2 : vector<1x1x128xf32> to vector<1x128xf32>
    %c0_4 = arith.constant 0 : index
    %c0_5 = arith.constant 0 : index
    %c0_6 = arith.constant 0 : index
    %4 = vector.load %arg3[%c0_4, %c0_5, %c0_6] : memref<1x4x128xf32, #tpu.memory_space<vmem>>, vector<1x2x128xf32>
    %5 = vector.shape_cast %4 : vector<1x2x128xf32> to vector<2x128xf32>
    %c0_7 = arith.constant 0 : index
    %c2 = arith.constant 2 : index
    %c0_8 = arith.constant 0 : index
    %6 = vector.load %arg3[%c0_7, %c2, %c0_8] : memref<1x4x128xf32, #tpu.memory_space<vmem>>, vector<1x2x128xf32>
    %7 = vector.shape_cast %6 : vector<1x2x128xf32> to vector<2x128xf32>
    %8 = arith.subf %7, %5 : vector<2x128xf32>
    %cst = arith.constant 5.000000e-01 : f32
    %9 = vector.broadcast %cst : f32 to vector<2x128xf32>
    %10 = arith.mulf %9, %8 : vector<2x128xf32>
    %11 = arith.addf %5, %10 : vector<2x128xf32>
    %c0_9 = arith.constant 0 : index
    %c0_10 = arith.constant 0 : index
    %c0_11 = arith.constant 0 : index
    %12 = vector.load %arg2[%c0_9, %c0_10, %c0_11] : memref<1x4x128xf32, #tpu.memory_space<vmem>>, vector<1x2x128xf32>
    %13 = vector.shape_cast %12 : vector<1x2x128xf32> to vector<2x128xf32>
    %cst_12 = arith.constant 1.000000e-01 : f32
    %14 = vector.broadcast %cst_12 : f32 to vector<2x128xf32>
    %15 = arith.mulf %13, %14 : vector<2x128xf32>
    %c0_13 = arith.constant 0 : index
    %c2_14 = arith.constant 2 : index
    %c0_15 = arith.constant 0 : index
    %16 = vector.load %arg2[%c0_13, %c2_14, %c0_15] : memref<1x4x128xf32, #tpu.memory_space<vmem>>, vector<1x2x128xf32>
    %17 = vector.shape_cast %16 : vector<1x2x128xf32> to vector<2x128xf32>
    %cst_16 = arith.constant 2.000000e-01 : f32
    %18 = vector.broadcast %cst_16 : f32 to vector<2x128xf32>
    %19 = arith.mulf %17, %18 : vector<2x128xf32>
    %20 = math.exp %19 : vector<2x128xf32>
    %21 = arith.mulf %20, %8 : vector<2x128xf32>
    %22 = arith.mulf %15, %8 : vector<2x128xf32>
    %23 = arith.addf %22, %11 : vector<2x128xf32>
    %cst_17 = arith.constant 5.000000e-01 : f32
    %24 = vector.broadcast %cst_17 : f32 to vector<2x128xf32>
    %25 = arith.mulf %24, %21 : vector<2x128xf32>
    %26 = arith.subf %23, %25 : vector<2x128xf32>
    %cst_18 = arith.constant 5.000000e-01 : f32
    %27 = vector.broadcast %cst_18 : f32 to vector<2x128xf32>
    %28 = arith.mulf %27, %21 : vector<2x128xf32>
    %29 = arith.addf %23, %28 : vector<2x128xf32>
    %30 = arith.fptosi %26 : vector<2x128xf32> to vector<2x128xi32>
    %c0_i32 = arith.constant 0 : i32
    %31 = vector.broadcast %c0_i32 : i32 to vector<2x128xi32>
    %32 = arith.maxsi %30, %31 : vector<2x128xi32>
    %33 = arith.sitofp %32 : vector<2x128xi32> to vector<2x128xf32>
    %34 = tpu.iota {dimensions = array<i32: 0>} : vector<2x128xi32>
    %c0_i32_19 = arith.constant 0 : i32
    %35 = vector.broadcast %c0_i32_19 : i32 to vector<2x128xi32>
    %36 = arith.cmpi eq, %34, %35 : vector<2x128xi32>
    %c127_i32 = arith.constant 127 : i32
    %c127_i32_20 = arith.constant 127 : i32
    %37 = vector.broadcast %c127_i32 : i32 to vector<2x128xi32>
    %38 = vector.broadcast %c127_i32_20 : i32 to vector<2x128xi32>
    %39 = arith.select %36, %37, %38 : vector<2x128xi1>, vector<2x128xi32>
    %40 = arith.fptosi %29 : vector<2x128xf32> to vector<2x128xi32>
    %41 = arith.minsi %40, %39 : vector<2x128xi32>
    %42 = arith.sitofp %41 : vector<2x128xi32> to vector<2x128xf32>
    %43 = arith.subf %42, %33 : vector<2x128xf32>
    %44 = vector.extract_strided_slice %43 {offsets = [0, 0], sizes = [1, 128], strides = [1, 1]} : vector<2x128xf32> to vector<1x128xf32>
    %45 = vector.extract_strided_slice %43 {offsets = [1, 0], sizes = [1, 128], strides = [1, 1]} : vector<2x128xf32> to vector<1x128xf32>
    %46 = arith.mulf %44, %45 : vector<1x128xf32>
    %cst_21 = arith.constant 0.000000e+00 : f32
    %47 = vector.broadcast %cst_21 : f32 to vector<2x128xf32>
    %48 = arith.subf %47, %42 : vector<2x128xf32>
    %49 = tpu.concatenate %33, %48, %1, %3, %42 in 0 : vector<2x128xf32>, vector<2x128xf32>, vector<1x128xf32>, vector<1x128xf32>, vector<2x128xf32> -> vector<8x128xf32>
    %50 = vector.extract_strided_slice %49 {offsets = [0, 0], sizes = [4, 128], strides = [1, 1]} : vector<8x128xf32> to vector<4x128xf32>
    %51 = tpu.iota {dimensions = array<i32: 1>} : vector<1x128xi32>
    %52 = tpu.iota {dimensions = array<i32: 1>} : vector<1x128xi32>
    %cst_22 = arith.constant 5.000000e-02 : f32
    %53 = vector.broadcast %cst_22 : f32 to vector<1x128xf32>
    %54 = arith.cmpf ogt, %1, %53 : vector<1x128xf32>
    %cst_23 = arith.constant -1.000000e+30 : f32
    %55 = vector.broadcast %cst_23 : f32 to vector<1x128xf32>
    %56 = arith.select %54, %1, %55 : vector<1x128xi1>, vector<1x128xf32>
    %cst_24 = arith.constant -1.000000e+00 : f32
    %57 = vector.broadcast %cst_24 : f32 to vector<8x128xf32>
    %cst_25 = arith.constant 5.000000e-02 : f32
    %cst_26 = arith.constant 5.000000e-01 : f32
    %c0_i32_27 = arith.constant 0 : i32
    %c16_i32 = arith.constant 16 : i32
    %58 = arith.addi %c0_i32_27, %c16_i32 : i32
    %c1_i32 = arith.constant 1 : i32
    %59:2 = scf.for %arg5 = %c0_i32_27 to %58 step %c1_i32 iter_args(%arg6 = %56, %arg7 = %57) -> (vector<1x128xf32>, vector<8x128xf32>)  : i32 {
      %cst_32 = arith.constant dense<0xFF800000> : vector<1xf32>
      %63 = vector.multi_reduction <maximumf>, %arg6, %cst_32 [1] : vector<1x128xf32> to vector<1xf32>
      %64 = vector.shape_cast %63 : vector<1xf32> to vector<1x1xf32>
      %65 = vector.broadcast %cst_25 : f32 to vector<1x1xf32>
      %66 = arith.cmpf ogt, %64, %65 : vector<1x1xf32>
      %67 = vector.broadcast %64 : vector<1x1xf32> to vector<1x128xf32>
      %68 = arith.cmpf oeq, %arg6, %67 : vector<1x128xf32>
      %c128_i32 = arith.constant 128 : i32
      %69 = vector.broadcast %c128_i32 : i32 to vector<1x128xi32>
      %70 = arith.select %68, %51, %69 : vector<1x128xi1>, vector<1x128xi32>
      %cst_33 = arith.constant dense<2147483647> : vector<1xi32>
      %71 = vector.multi_reduction <minsi>, %70, %cst_33 [1] : vector<1x128xi32> to vector<1xi32>
      %72 = vector.shape_cast %71 : vector<1xi32> to vector<1x1xi32>
      %73 = vector.broadcast %72 : vector<1x1xi32> to vector<1x128xi32>
      %74 = arith.cmpi eq, %51, %73 : vector<1x128xi32>
      %cst_34 = arith.constant 0.000000e+00 : f32
      %75 = vector.shape_cast %74 : vector<1x128xi1> to vector<1x128xi1>
      %76 = vector.broadcast %75 : vector<1x128xi1> to vector<8x128xi1>
      %77 = vector.broadcast %cst_34 : f32 to vector<8x128xf32>
      %78 = arith.select %76, %49, %77 : vector<8x128xi1>, vector<8x128xf32>
      %cst_35 = arith.constant dense<0.000000e+00> : vector<8xf32>
      %79 = vector.multi_reduction <add>, %78, %cst_35 [1] : vector<8x128xf32> to vector<8xf32>
      %80 = vector.shape_cast %79 : vector<8xf32> to vector<8x1xf32>
      %81 = vector.broadcast %arg5 : i32 to vector<1x128xi32>
      %82 = arith.cmpi eq, %52, %81 : vector<1x128xi32>
      %83 = vector.broadcast %66 : vector<1x1xi1> to vector<1x128xi1>
      %84 = arith.andi %82, %83 : vector<1x128xi1>
      %85 = vector.shape_cast %84 : vector<1x128xi1> to vector<1x128xi1>
      %86 = vector.broadcast %85 : vector<1x128xi1> to vector<8x128xi1>
      %87 = vector.shape_cast %80 : vector<8x1xf32> to vector<8x1xf32>
      %88 = vector.broadcast %87 : vector<8x1xf32> to vector<8x128xf32>
      %89 = arith.select %86, %88, %arg7 : vector<8x128xi1>, vector<8x128xf32>
      %90 = vector.extract_strided_slice %80 {offsets = [0, 0], sizes = [4, 1], strides = [1, 1]} : vector<8x1xf32> to vector<4x1xf32>
      %91 = vector.broadcast %90 : vector<4x1xf32> to vector<4x128xf32>
      %92 = arith.maximumf %50, %91 : vector<4x128xf32>
      %93 = vector.extract_strided_slice %92 {offsets = [0, 0], sizes = [2, 128], strides = [1, 1]} : vector<4x128xf32> to vector<2x128xf32>
      %94 = vector.extract_strided_slice %92 {offsets = [2, 0], sizes = [2, 128], strides = [1, 1]} : vector<4x128xf32> to vector<2x128xf32>
      %95 = arith.addf %93, %94 : vector<2x128xf32>
      %cst_36 = arith.constant 0.000000e+00 : f32
      %96 = vector.broadcast %cst_36 : f32 to vector<2x128xf32>
      %97 = arith.subf %96, %95 : vector<2x128xf32>
      %cst_37 = arith.constant 0.000000e+00 : f32
      %98 = vector.broadcast %cst_37 : f32 to vector<2x128xf32>
      %99 = arith.maximumf %97, %98 : vector<2x128xf32>
      %100 = vector.extract_strided_slice %99 {offsets = [0, 0], sizes = [1, 128], strides = [1, 1]} : vector<2x128xf32> to vector<1x128xf32>
      %101 = vector.extract_strided_slice %99 {offsets = [1, 0], sizes = [1, 128], strides = [1, 1]} : vector<2x128xf32> to vector<1x128xf32>
      %102 = arith.mulf %100, %101 : vector<1x128xf32>
      %103 = vector.extract_strided_slice %80 {offsets = [6, 0], sizes = [1, 1], strides = [1, 1]} : vector<8x1xf32> to vector<1x1xf32>
      %104 = vector.extract_strided_slice %80 {offsets = [0, 0], sizes = [1, 1], strides = [1, 1]} : vector<8x1xf32> to vector<1x1xf32>
      %105 = arith.subf %103, %104 : vector<1x1xf32>
      %106 = vector.extract_strided_slice %80 {offsets = [7, 0], sizes = [1, 1], strides = [1, 1]} : vector<8x1xf32> to vector<1x1xf32>
      %107 = vector.extract_strided_slice %80 {offsets = [1, 0], sizes = [1, 1], strides = [1, 1]} : vector<8x1xf32> to vector<1x1xf32>
      %108 = arith.subf %106, %107 : vector<1x1xf32>
      %109 = arith.mulf %105, %108 : vector<1x1xf32>
      %110 = vector.broadcast %109 : vector<1x1xf32> to vector<1x128xf32>
      %111 = arith.addf %110, %46 : vector<1x128xf32>
      %112 = arith.subf %111, %102 : vector<1x128xf32>
      %cst_38 = arith.constant 9.99999974E-5 : f32
      %113 = vector.broadcast %cst_38 : f32 to vector<1x128xf32>
      %114 = arith.maximumf %112, %113 : vector<1x128xf32>
      %115 = vector.broadcast %cst_26 : f32 to vector<1x128xf32>
      %116 = arith.mulf %115, %114 : vector<1x128xf32>
      %117 = arith.cmpf oge, %102, %116 : vector<1x128xf32>
      %118 = arith.ori %117, %74 : vector<1x128xi1>
      %119 = vector.broadcast %66 : vector<1x1xi1> to vector<1x128xi1>
      %120 = arith.andi %118, %119 : vector<1x128xi1>
      %cst_39 = arith.constant -1.000000e+30 : f32
      %121 = vector.broadcast %cst_39 : f32 to vector<1x128xf32>
      %122 = arith.select %120, %121, %arg6 : vector<1x128xi1>, vector<1x128xf32>
      scf.yield %122, %89 : vector<1x128xf32>, vector<8x128xf32>
    }
    %c16_i32_28 = arith.constant 16 : i32
    %c0_29 = arith.constant 0 : index
    %c0_30 = arith.constant 0 : index
    %c0_31 = arith.constant 0 : index
    %60 = vector.load %arg4[%c0_29, %c0_30, %c0_31] : memref<1x8x128xf32, #tpu.memory_space<vmem>>, vector<1x8x128xf32>
    %61 = vector.shape_cast %60 : vector<1x8x128xf32> to vector<8x128xf32>
    %62 = vector.shape_cast %59#1 : vector<8x128xf32> to vector<1x8x128xf32>
    tpu.vector_store %arg4[%c0_29, %c0_30, %c0_31], %62 {strides = array<i32>} : memref<1x8x128xf32, #tpu.memory_space<vmem>>, vector<1x8x128xf32>,
    return
  }
  func.func @transform_0(%arg0: i32) -> (i32, i32, i32) {
    %c0_i32 = arith.constant 0 : i32
    %c0_i32_0 = arith.constant 0 : i32
    %c0_i32_1 = arith.constant 0 : i32
    return %arg0, %c0_i32, %c0_i32_0 : i32, i32, i32
  }
  func.func @transform_1(%arg0: i32) -> (i32, i32, i32) {
    %c0_i32 = arith.constant 0 : i32
    %c0_i32_0 = arith.constant 0 : i32
    %c0_i32_1 = arith.constant 0 : i32
    return %arg0, %c0_i32, %c0_i32_0 : i32, i32, i32
  }
  func.func @transform_2(%arg0: i32) -> (i32, i32, i32) {
    %c0_i32 = arith.constant 0 : i32
    %c0_i32_0 = arith.constant 0 : i32
    %c0_i32_1 = arith.constant 0 : i32
    return %arg0, %c0_i32, %c0_i32_0 : i32, i32, i32
  }
  func.func @transform_3(%arg0: i32) -> (i32, i32, i32) {
    %c0_i32 = arith.constant 0 : i32
    %c0_i32_0 = arith.constant 0 : i32
    %c0_i32_1 = arith.constant 0 : i32
    return %arg0, %c0_i32, %c0_i32_0 : i32, i32, i32
  }
}

</mosaic_0001>

<bundles_post_ra>
// kernel: tpu_custom_call.1
= control target key start
LH: loop header
LB: loop body
LE: loop exit
PB: predicated region body
PF: predicated region fallthrough
CT: control target
= control target key end

     0   :  { %s1118_s0 = inlined_call_operand.hbm [shape: f32[2,2,128], index: 0, kind: input, shape index: {}]   ;;  %s1119_s1 = inlined_call_operand.hbm [shape: f32[2,4,128], index: 1, kind: input, shape index: {}]   ;;  %s1120_s2 = inlined_call_operand.hbm [shape: f32[2,4,128], index: 2, kind: input, shape index: {}]   ;;  %s1121_s3 = inlined_call_operand.hbm [shape: f32[2,8,128], index: 3, kind: output, shape index: {}]  }
   0x1   :  { %1126 = sst [smem:[#allocation14_spill]] %s1119_s1 }
   0x2   :  { %8 = vsyncpa [#allocation3], 0 }
   0x3   :  { %10 = vsyncpa [#allocation3 + $0x1], 0 }
   0x4   :  { %11 = vsyncpa [#allocation6], 0 }
   0x5   :  { %13 = vsyncpa [#allocation6 + $0x1], 0 }
   0x6   :  { %14 = vsyncpa [#allocation4], 0 }
   0x7   :  { %16 = vsyncpa [#allocation4 + $0x1], 0  ;;  %s857_s12 = smov 0   ;;  %s859_s13 = smov 0  }
   0x8   :  { %s861_s14 = smov 0   ;;  %s863_s15 = smov 0  }
   0x9 LB: > { %1127 = sst [smem:[#allocation12_spill]] %s814_s14  ;;  %s878_s16 = sadd.s32 4294967295, %s818_s15   ;;  %s818_s15 = sphi %s863_s15, %s1147_s15   ;;  %s814_s14 = sphi %s861_s14, %s1144_s14   ;;  %s810_s13 = sphi %s859_s13, %s1146_s13   ;;  %s806_s12 = sphi %s857_s12, %s1145_s12  }
   0xa   : > { %s546_s17 = sadd.s32 4294967294, %s818_s15   ;;  %s882_s18 = sadd.s32 1, %s818_s15  }
   0xb   : > { %s29_s19 = sadd.s32 1, %s814_s14  ;;  %s26_s20 = ssub.s32 %s818_s15, %s882_s18 }
   0xc   : > { %p36_p0 = scmp.ne.s32.totalorder %s814_s14, %s810_s13  ;;  %p27_p1 = scmp.eq.s32.totalorder %s26_s20, 0 }
   0xd   : > { %p37_p2 = scmp.eq.s32.totalorder %s818_s15, 0  ;;  %p42_p3 = scmp.ne.s32.totalorder %s810_s13, %s806_s12 }
   0xe   : > { %p43_p4 = scmp.eq.s32.totalorder %s878_s16, 0  ;;  %p118_p7 = scmp.eq.s32.totalorder %s878_s16, 1 }
   0xf   : > { %s894_s21 = scalar_select %p27_p1, %s814_s14, %s29_s19  }
  0x10   : > { %p38_p5 = por %p37_p2, %p36_p0  ;;  %p896_p6 = por %p43_p4, %p42_p3 }
  0x11   : > { %1128 = sst [smem:[#allocation13_spill]] %s894_s21  ;;  %p124_p8 = scmp.eq.s32.totalorder %s546_s17, 1 }
  0x12   : > { %s1129_s22 = scalar_select %p896_p6, 1, 0 }
  0x13   : > { %p592_p10 = scmp.lt.s32.totalorder %s818_s15, 2  ;;  %p903_p11 = por %p118_p7, %p36_p0 }
  0x14   : > { %p907_p12 = por %p124_p8, %p42_p3  ;;  %s912_s25 = sand.u32 1, %s814_s14  }
  0x15   : > { %s1130_s23 = scalar_select %p903_p11, 1, 0 }
  0x16   : > { %s1131_s24 = scalar_select %p907_p12, 1, 0 }
  0x17   : > { %p914_p13 = pnand %p592_p10, %p38_p5  ;;  %s162_s27 = sand.u32 1, %s818_s15  }
  0x18   : > { %s1122_s28 = sshll.u32 %s912_s25, 2  ;;  %s552_s29 = sshll.u32 %s818_s15, 6 }
  0x19   : > { %s1133_s1 = sld [smem:[#allocation14_spill]]  ;;  %s166_s6 = scalar_lea.vmem [#allocation5], %s1122_s28 }
  0x1a   : > { %s173_s7 = sshll.u32 %s166_s6, 4  ;;  %s930_s8 = scalar_lea.sflag [#allocation6], %s162_s27  ;;  %s174_s7 = int_to_ptr.vmem [resolvable:$true] %s173_s7 }
  0x1b   : > { %p936_p1 = pneg %p914_p13 }
  0x1f   : > { %s926_s5 = scalar_lea.hbm %s1133_s1, %s552_s29  ;;  %s659_s19 = scalar_lea.hbm %s1133_s1, 128 }
  0x20   : > { %s654_s9 = scalar_lea.hbm %s926_s5, 64  ;;  %p660_p4 = scmp.lt.s32.totalorder %s926_s5, %s1133_s1 }
  0x21   : > { %p655_p0 = scmp.ne.s32.totalorder %s926_s5, %s654_s9  ;;  %p661_p5 = scmp.lt.s32.totalorder %s659_s19, %s654_s9 }
  0x23   : > { %p657_p2 = pnand %p936_p1, %p655_p0  ;;  %p662_p7 = por %p661_p5, %p660_p4 }
  0x25   : > { %p658_p3 = pneg %p657_p2 }
  0x27   : > { %p663_p8 = pnand %p662_p7, %p658_p3 }
  0x29   : > { %666 = shalt.err (!%p663_p8)
}
  0x2a   : > { %s667_s27 = scalar_lea.vmem %s174_s7, 64  ;;  %s832_s4 = smov [#allocation5]  }
  0x2b   : > { %p668_p10 = scmp.ne.s32.totalorder %s174_s7, %s667_s27  ;;  %s672_s6 = sshll.u32 %s832_s4, 4  ;;  %s673_s6 = int_to_ptr.vmem [resolvable:$false] %s672_s6 }
  0x2c   : > { %s674_s28 = scalar_lea.vmem %s673_s6, 128  ;;  %p675_p0 = scmp.lt.s32.totalorder %s174_s7, %s673_s6 }
  0x2d   : > { %p670_p9 = pnand %p668_p10, %p936_p1  ;;  %p676_p2 = scmp.lt.s32.totalorder %s674_s28, %s667_s27 }
  0x2f   : > { %p671_p12 = pneg %p670_p9  ;;  %p677_p11 = por %p676_p2, %p675_p0 }
  0x31   : > { %p678_p6 = pnand %p677_p11, %p671_p12 }
  0x33   : > { %681 = shalt.err (!%p678_p6)
}
  0x34   : > { %584 = dma.hbm_to_vmem [thread:$0]  (!%p914_p13), %s926_s5, 64, %s174_s7, %s930_s8  }
  0x35   : > { %s960_s28 = scalar_lea.hbm %s1120_s2, %s552_s29  ;;  %p555_p6 = scmp.ge.s32.totalorder %s818_s15, 1 }
  0x36   : > { %p196_p9 = scmp.lt.s32.totalorder %s818_s15, 3  ;;  %s549_s17 = sshll.u32 %s912_s25, 1 }
  0x37   : > { %s550_s19 = sshll.u32 %s818_s15, 5  ;;  %s148_s5 = scalar_lea.vmem [#allocation2], %s549_s17 }
  0x38   : > { %p966_p11 = pnand %p555_p6, %p196_p9  ;;  %s973_s4 = scalar_lea.hbm %s1118_s0, %s550_s19 }
  0x39   : > { %s155_s7 = sshll.u32 %s148_s5, 4  ;;  %s1136_s29 = sshll.u32 %s912_s25, 2  ;;  %s156_s7 = int_to_ptr.vmem [resolvable:$true] %s155_s7 }
  0x3a   : > { %s1135_s20 = scalar_select %p966_p11, 1, 0 }
  0x3b   : > { %s184_s6 = scalar_lea.vmem [#allocation7], %s1136_s29  ;;  %s145_s11 = scalar_lea.sflag [#allocation3], %s912_s25 }
  0x3c   : > { %s191_s9 = sshll.u32 %s184_s6, 4  ;;  %s682_s1 = scalar_lea.hbm %s973_s4, 32  ;;  %s192_s9 = int_to_ptr.vmem [resolvable:$true] %s191_s9 }
  0x3d   : > { %p683_p12 = scmp.ne.s32.totalorder %s973_s4, %s682_s1  ;;  %s687_s19 = scalar_lea.hbm %s1118_s0, 64 }
  0x3e   : > { %p688_p5 = scmp.lt.s32.totalorder %s973_s4, %s1118_s0  ;;  %p689_p7 = scmp.lt.s32.totalorder %s687_s19, %s682_s1 }
  0x3f   : > { %p685_p3 = pnand %p683_p12, %p936_p1 }
  0x40   : > { %p690_p8 = por %p689_p7, %p688_p5 }
  0x41   : > { %p686_p4 = pneg %p685_p3 }
  0x43   : > { %p691_p10 = pnand %p690_p8, %p686_p4 }
  0x45   : > { %694 = shalt.err (!%p691_p10)
}
  0x46   : > { %s695_s17 = scalar_lea.vmem %s156_s7, 32  ;;  %s833_s25 = smov [#allocation2]  }
  0x47   : > { %p696_p0 = scmp.ne.s32.totalorder %s156_s7, %s695_s17  ;;  %s700_s5 = sshll.u32 %s833_s25, 4  ;;  %s701_s5 = int_to_ptr.vmem [resolvable:$false] %s700_s5 }
  0x48   : > { %s702_s29 = scalar_lea.vmem %s701_s5, 64  ;;  %p703_p9 = scmp.lt.s32.totalorder %s156_s7, %s701_s5 }
  0x49   : > { %p698_p2 = pnand %p696_p0, %p936_p1  ;;  %p704_p12 = scmp.lt.s32.totalorder %s702_s29, %s695_s17 }
  0x4b   : > { %p699_p6 = pneg %p698_p2  ;;  %p705_p3 = por %p704_p12, %p703_p9 }
  0x4d   : > { %p706_p11 = pnand %p705_p3, %p699_p6 }
  0x4f   : > { %709 = shalt.err (!%p706_p11)
}
  0x50   : > { %581 = dma.hbm_to_vmem [thread:$0]  (!%p914_p13), %s973_s4, 32, %s156_s7, %s145_s11  }
  0x51   : > { %s710_s1 = scalar_lea.hbm %s960_s28, 64  ;;  %s715_s6 = scalar_lea.hbm %s1120_s2, 128 }
  0x52   : > { %p711_p4 = scmp.ne.s32.totalorder %s960_s28, %s710_s1  ;;  %p716_p11 = scmp.lt.s32.totalorder %s960_s28, %s1120_s2 }
  0x53   : > { %p717_p8 = scmp.lt.s32.totalorder %s715_s6, %s710_s1 }
  0x54   : > { %p713_p5 = pnand %p711_p4, %p936_p1 }
  0x55   : > { %p718_p10 = por %p717_p8, %p716_p11 }
  0x56   : > { %p714_p7 = pneg %p713_p5 }
  0x58   : > { %p719_p0 = pnand %p718_p10, %p714_p7 }
  0x5a   : > { %722 = shalt.err (!%p719_p0)
}
  0x5b   : > { %s723_s27 = scalar_lea.vmem %s192_s9, 64  ;;  %s834_s4 = smov [#allocation7]  }
  0x5c   : > { %p724_p2 = scmp.ne.s32.totalorder %s192_s9, %s723_s27  ;;  %s728_s7 = sshll.u32 %s834_s4, 4  ;;  %s729_s7 = int_to_ptr.vmem [resolvable:$false] %s728_s7 }
  0x5d   : > { %s730_s11 = scalar_lea.vmem %s729_s7, 128  ;;  %p731_p12 = scmp.lt.s32.totalorder %s192_s9, %s729_s7 }
  0x5e   : > { %p726_p6 = pnand %p724_p2, %p936_p1  ;;  %p732_p3 = scmp.lt.s32.totalorder %s730_s11, %s723_s27 }
  0x60   : > { %p727_p9 = pneg %p726_p6  ;;  %p733_p4 = por %p732_p3, %p731_p12 }
  0x62   : > { %p734_p5 = pnand %p733_p4, %p727_p9 }
  0x64   : > { %737 = shalt.err (!%p734_p5)
}
  0x65   : > { %587 = dma.hbm_to_vmem [thread:$0]  (!%p914_p13), %s960_s28, 64, %s192_s9, %s930_s8  }
  0x66   : > { %p1137_p7 = scmp.ne.s32.totalorder %s1135_s20, 0 }
  0x67   : > { %s1014_s10 = sand.u32 (!%p1137_p7), 1, %s810_s13   ;;  %p1138_p1 = scmp.ne.s32.totalorder (!%p1137_p7), %s1129_s22, 0 }
  0x68   : > { %200 = sbr.rel (%p1137_p7) target bundleno = 885 (0x375), region = 32  ;;  %s556_s17 = sshll.u32 (!%p1137_p7), %s1014_s10, 1 }
  0x69   : > { %s203_s25 = scalar_lea.sflag (!%p1137_p7), [#allocation3], %s1014_s10  ;;  %s1018_s5 = scalar_lea.vmem (!%p1137_p7), [#allocation2], %s556_s17 }
  0x6d   : > { %793 = dma.done.wait (%p1138_p1), %s203_s25, 32  }
  0x6e   : > { %795 = vsyncadd (%p1138_p1), %s203_s25, 4294967264  ;;  %s211_s26 = sand.u32 1, %s878_s16   ;;  %s557_s8 = sshll.u32 %s1014_s10, 2 }
  0x6f   : > { %s212_s28 = scalar_lea.sflag [#allocation6], %s211_s26  ;;  %s215_s20 = scalar_lea.vmem [#allocation5], %s557_s8 }
  0x70   : > { %797 = dma.done.wait (%p1138_p1), %s212_s28, 128  }
  0x71   : > { %799 = vsyncadd (%p1138_p1), %s212_s28, 4294967168  ;;  %s559_s9 = sshll.u32 %s1014_s10, 3  ;;  %v310_v0 = vlaneseq  ;;  %v266_v2 = vld [vmem:[%s215_s20 + $0x2] sm:$0x3]  ;;  %v257_v3 = vld [vmem:[%s1018_s5] sm:$0x1] }
  0x72   : > { %v267_v4 = vmul.f32 0.2, %v266_v2  ;;  %vm312_vm0 = vcmp.gt.f32.partialorder %v257_v3, 0.05  ;;  %s224_s29 = scalar_lea.vmem [#allocation7], %s557_s8  ;;  %v294_v32 = vrot.slane %v257_v3, 4 }
  0x73   : > { %v1032_v1 = vand.u32 127, %v310_v0  ;;  %v313_v6 = vsel %vm312_vm0, %v257_v3, -1e+30   ;;  %v259_v7 = vld [vmem:[%s224_s29] sm:$0x3]  ;;  %vm302_vm3 = vcmask 1041408  }
  0x74   : > { %v268_v5 = vmul.f32 1.442695, %v267_v4  ;;  %v260_v8 = vld [vmem:[%s224_s29 + $0x2] sm:$0x3]  ;;  %v264_v10 = vld [vmem:[%s215_s20] sm:$0x3] }
  0x75   : > { %v261_v9 = vsub.f32 %v260_v8, %v259_v7  ;;  %v265_v12 = vmul.f32 0.1, %v264_v10  ;;  %v258_v29 = vld [vmem:[%s1018_s5 + $0x1] sm:$0x1]  ;;  %vm304_vm4 = vcmask 1043456   ;;  %vm306_vm5 = vcmask 1044480  }
  0x76   : > { %651 = vpow2.f32 %v268_v5  ;;  %v297_v35 = vrot.slane %v258_v29, 3  ;;  %vm308_vm6 = vcmask 1045504   ;;  %s1042_s22 = scalar_lea.vmem [#allocation8], %s559_s9  ;;  %v1044_v42 = vmov -1.0   ;;  %s1048_s1 = smov 0  }
  0x77   : > { %v262_v11 = vmul.f32 0.5, %v261_v9  ;;  %v271_v14 = vmul.f32 %v265_v12, %v261_v9 }
  0x79   : > { %v263_v13 = vadd.f32 %v262_v11, %v259_v7 }
  0x7b   : > { %v272_v17 = vadd.f32 %v271_v14, %v263_v13 }
  0x83   : > { %v652_v15 = vpop.eup %651 }
  0x84   : > { %v270_v16 = vmul.f32 %v652_v15, %v261_v9 }
  0x86   : > { %v273_v18 = vmul.f32 0.5, %v270_v16 }
  0x88   : > { %v274_v19 = vsub.f32 %v272_v17, %v273_v18  ;;  %v275_v20 = vadd.f32 %v273_v18, %v272_v17 }
  0x8a   : > { %v566_v21 = vtrunc.f32 %v274_v19  ;;  %v568_v22 = vtrunc.f32 %v275_v20 }
  0x8c   : > { %v567_v23 = vcvt.f32.s32 %v566_v21  ;;  %v569_v24 = vcvt.f32.s32 %v568_v22 }
  0x8e   : > { %vm277_vm1 = vcmp.gt.s32.totalorder %v567_v23, 0  ;;  %v560_v25 = vcvt.s32.f32 %v567_v23  ;;  %vm281_vm2 = vcmp.lt.s32.totalorder %v569_v24, 127 }
  0x8f   : > { %v282_v26 = vsel %vm281_vm2, %v569_v24, 127 }
  0x90   : > { %v561_v27 = vsel %vm277_vm1, %v560_v25, 0.0  ;;  %v283_v28 = vcvt.s32.f32 %v282_v26 }
  0x92   : > { %v284_v30 = vsub.f32 %v283_v28, %v561_v27  ;;  %v289_v31 = vsub.f32 0.0, %v283_v28  ;;  %v300_v36 = vrot.slane %v283_v28, 2 }
  0x94   : > { %v286_v33 = vrot.slane %v284_v30, 1  ;;  %v291_v34 = vrot.slane %v289_v31, 6 }
  0x96   : > { %v1036_v37 = vmul.f32 %v286_v33, %v284_v30  ;;  %v303_v38 = vsel %vm302_vm3, %v561_v27, %v291_v34 }
  0x97   : > { %v305_v39 = vsel %vm304_vm4, %v303_v38, %v294_v32 }
  0x98   : > { %v307_v40 = vsel %vm306_vm5, %v305_v39, %v297_v35 }
  0x99   : > { %v1038_v41 = vsel %vm308_vm6, %v307_v40, %v300_v36 }
  0x9a LB: >> { %vm322_vm7 = vcmask 1040384   ;;  %v835_v43 = vmov 0   ;;  %v347_v58 = vshrl.u32 %v310_v0, 7  ;;  %v354_v2 = vstv %s830_s1  ;;  %s319_s1 = sadd.s32 1, %s830_s1   ;;  %s830_s1 = sphi %s1048_s1, %s319_s1   ;;  %v826_v6 = vphi %v313_v6, %v406_v6   ;;  %v822_v42 = vphi %v1044_v42, %v1139_v42  }
  0x9b   : >> { %653 = vset.pattern.permute.xlu0 %v835_v43  ;;  %v323_v44 = vsel %vm322_vm7, %v826_v6, -inf  ;;  %vm355_vm12 = vcmp.eq.s32.totalorder %v1032_v1, %v354_v2  ;;  %v391_v18 = vrot.slane %v1036_v37, 2  ;;  %p316_p13 = scmp.ge.s32.totalorder %s319_s1, 16  }
  0x9c   : >> { %324 = vmax.xlane.f32.xlu0 %v323_v44  ;;  %v348_v60 = vsub.s32 0, %v347_v58  ;;  %s563_s14 = sshll.u32 (%p316_p13), %s878_s16, 7  ;;  %s422_s30 = sshll.u32 (%p316_p13), %s1042_s22, 4  ;;  %s423_s30 = int_to_ptr.vmem [resolvable:$true] %s422_s30 }
  0x9d   : > { %s420_s19 = scalar_lea.hbm (%p316_p13), %s1121_s3, %s563_s14  ;;  %s409_s27 = scalar_lea.sflag (%p316_p13), [#allocation4], %s1014_s10 }
  0x9e   : > { %s738_s4 = scalar_lea.vmem (%p316_p13), %s423_s30, 128  ;;  %p1140_p8 = scmp.ne.s32.totalorder (%p316_p13), %s1130_s23, 0 }
  0x9f   : > { %p739_p11 = scmp.ne.s32.totalorder (%p316_p13), %s423_s30, %s738_s4  ;;  %s836_s7 = smov (%p316_p13), [#allocation8]  }
  0xa0   : > { %s742_s11 = sshll.u32 (%p316_p13), %s836_s7, 4  ;;  %s743_s11 = int_to_ptr.vmem [resolvable:$false] %s742_s11 }
  0xa1   : > { %p740_p10 = pnand (%p316_p13), %p739_p11, %p1140_p8  ;;  %s744_s17 = scalar_lea.vmem (%p316_p13), %s743_s11, 256 }
  0xa2   : > { %p745_p2 = scmp.lt.s32.totalorder (%p316_p13), %s423_s30, %s743_s11  ;;  %p746_p6 = scmp.lt.s32.totalorder (%p316_p13), %s744_s17, %s738_s4 }
  0xa3   : > { %p741_p0 = pneg (%p316_p13), %p740_p10 }
  0xa4   : > { %p747_p9 = por (%p316_p13), %p746_p6, %p745_p2 }
  0xa6   : > { %p748_p12 = pnand (%p316_p13), %p747_p9, %p741_p0 }
 0x125   : >> { %v325_v45 = vpop.xlane.xlu0 %324 }
 0x126   : >> { %vm327_vm8 = vcmp.eq.f32.partialorder %v826_v6, %v325_v45  ;;  %vm326_vm13 = vcmp.gt.f32.partialorder %v325_v45, 0.05 }
 0x127   : >> { %v328_v46 = vsel %vm327_vm8, %v1032_v1, 128  ;;  %vm358_vm14 = vmand %vm355_vm12, %vm326_vm13 }
 0x128   : >> { %v329_v47 = vsel %vm322_vm7, %v328_v46, 2147483647  ;;  %v359_v3 = vsel %vm358_vm14, 1, %v835_v43 }
 0x129   : >> { %v331_v48 = vshra.s32 %v329_v47, 16  ;;  %v330_v50 = vand.u32 65535, %v329_v47  ;;  %v363_v4 = vrot.slane %v359_v3, %v348_v60 }
 0x12b   : >> { %v333_v49 = vcvt.s32.f32 %v331_v48  ;;  %v332_v52 = vcvt.s32.f32 %v330_v50  ;;  %vm364_vm15 = vcmp.eq.s32.totalorder %v363_v4, 1 }
 0x12d   : >> { %334 = vmin.xlane.f32.xlu0 %v333_v49 }
 0x1b6   : >> { %v335_v51 = vpop.xlane.xlu0 %334 }
 0x1b7   : >> { %vm336_vm9 = vcmp.eq.f32.partialorder %v333_v49, %v335_v51  ;;  %v341_v54 = vcvt.f32.s32 %v335_v51 }
 0x1b8   : >> { %v337_v53 = vsel %vm336_vm9, %v332_v52, inf }
 0x1b9   : >> { %338 = vmin.xlane.f32.xlu1 %v337_v53  ;;  %v342_v56 = vshll.u32 %v341_v54, 16 }
 0x242   : >> { %v339_v55 = vpop.xlane.xlu1 %338 }
 0x243   : >> { %v340_v57 = vcvt.f32.s32 %v339_v55 }
 0x245   : >> { %v343_v59 = vadd.s32 %v342_v56, %v340_v57 }
 0x247   : >> { %vm344_vm10 = vcmp.eq.s32.totalorder %v1032_v1, %v343_v59 }
 0x248   : >> { %v345_v61 = vsel %vm344_vm10, 1, %v835_v43 }
 0x249   : >> { %v349_v62 = vrot.slane %v345_v61, %v348_v60 }
 0x24b   : >> { %vm350_vm11 = vcmp.eq.s32.totalorder %v349_v62, 1 }
 0x24c   : >> { %v351_v63 = vsel %vm350_vm11, %v1038_v41, 0.0 }
 0x24d   : >> { %352 = vadd.xlane.f32.xlu1 %v351_v63 }
 0x2d6   : >> { %v353_v5 = vpop.xlane.xlu1 %352 }
 0x2d7   : >> { %v365_v7 = vsel %vm364_vm15, %v353_v5, %v822_v42   ;;  %v378_v8 = vrot.slane %v353_v5, 2  ;;  %v366_v12 = vmax.f32 %v1038_v41, %v353_v5 }
 0x2d8   : >> { %v1139_v42 = vmov %v365_v7  ;;  %407 = vst [vmem:[%s1042_s22] sm:$0xff] (%p316_p13), %v365_v7 }
 0x2d9   : >> { %v380_v9 = vsub.f32 %v353_v5, %v378_v8  ;;  %v368_v13 = vrot.slane %v366_v12, 2 }
 0x2db   : >> { %v382_v10 = vrot.slane %v380_v9, 1  ;;  %v370_v14 = vadd.f32 %v368_v13, %v366_v12 }
 0x2dd   : >> { %v384_v11 = vmul.f32 %v382_v10, %v380_v9  ;;  %v371_v15 = vsub.f32 0.0, %v370_v14 }
 0x2df   : >> { %387 = vperm.xlu0 %653, %v384_v11   ;;  %v372_v16 = vmax.f32 %v371_v15, 0.0 }
 0x2e1   : >> { %v374_v17 = vrot.slane %v372_v16, 1 }
 0x2e3   : >> { %v376_v19 = vmul.f32 %v374_v17, %v372_v16 }
 0x2e5   : >> { %v395_v22 = vrot.slane %v376_v19, 2 }
 0x35a   : >> { %v388_v20 = vpop.permute.xlu0 %387 }
 0x35b   : >> { %v393_v21 = vadd.f32 %v391_v18, %v388_v20 }
 0x35d   : >> { %v397_v23 = vsub.f32 %v393_v21, %v395_v22 }
 0x35f   : >> { %v398_v24 = vmax.f32 %v397_v23, 0.0001 }
 0x361   : >> { %v399_v25 = vmul.f32 0.5, %v398_v24 }
 0x363   : >> { %v401_v26 = vrot.slane %v399_v25, 6 }
 0x364   : > { %318 = sbr.rel (!%p316_p13) target bundleno = 154 (0x9a), region = 108 }
 0x365   : >> { %vm403_vm0 = vcmp.ge.f32.partialorder %v376_v19, %v401_v26 }
 0x366   : >> { %vm404_vm1 = vmor %vm403_vm0, %vm344_vm10 }
 0x367   : >> { %vm405_vm2 = vmand %vm404_vm1, %vm326_vm13 }
 0x368   : >> { %v406_v6 = vsel %vm405_vm2, -1e+30, %v826_v6  }
 0x369   : > { %751 = shalt.err (!%p748_p12)
}
 0x36a   : > { %s752_s16 = scalar_lea.hbm %s420_s19, 128  ;;  %s756_s5 = scalar_lea.hbm %s1121_s3, 256 }
 0x36b   : > { %p753_p3 = scmp.ne.s32.totalorder %s420_s19, %s752_s16  ;;  %p757_p7 = scmp.lt.s32.totalorder %s420_s19, %s1121_s3 }
 0x36c   : > { %p758_p1 = scmp.lt.s32.totalorder %s756_s5, %s752_s16 }
 0x36d   : > { %p754_p4 = pnand %p753_p3, %p1140_p8 }
 0x36e   : > { %p759_p13 = por %p758_p1, %p757_p7 }
 0x36f   : > { %p755_p5 = pneg %p754_p4 }
 0x371   : > { %p760_p11 = pnand %p759_p13, %p755_p5 }
 0x373   : > { %763 = shalt.err (!%p760_p11)
}
 0x374   : > { %576 = dma.vmem_to_hbm [thread:$0]  (%p1140_p8), %s423_s30, 128, %s420_s19, %s409_s27  }
 0x375 PF: > { %s434_s28 = sand.u32 1, %s806_s12   ;;  %p1141_p10 = scmp.ne.s32.totalorder %s1131_s24, 0 }
 0x376   : > { %p1142_p0 = scmp.ge.s32.totalorder %s818_s15, 2  ;;  %s435_s20 = scalar_lea.sflag [#allocation4], %s434_s28 }
 0x378   : > { %p589_p2 = pnand %p1142_p0, %p1141_p10 }
 0x37a   : > { %p590_p6 = pneg %p589_p2 }
 0x37c   : > { %801 = dma.done.wait (%p590_p6), %s435_s20, 128  }
 0x37d   : > { %803 = vsyncadd (%p590_p6), %s435_s20, 4294967168  ;;  %s1143_s9 = sld [smem:[#allocation12_spill]]  ;;  %p19_p9 = scmp.ge.s32.totalorder %s882_s18, 4  }
 0x37e   : > { %s1144_s14 = sld [smem:[#allocation13_spill]]  ;;  %s1145_s12 = smov %s810_s13 }
 0x37f   : > { %s1147_s15 = smov %s882_s18  ;;  %21 = sbr.rel (!%p19_p9) target bundleno = 9 (0x9), region = 119 }
 0x383   : > { %s1146_s13 = smov %s1143_s9 }
 0x384   :  { %440 = vsyncpa [#allocation3], 1 }
 0x385   :  { %442 = vsyncpa [#allocation3 + $0x1], 1 }
 0x386   :  { %443 = vsyncpa [#allocation6], 1 }
 0x387   :  { %445 = vsyncpa [#allocation6 + $0x1], 1 }
 0x388   :  { %446 = vsyncpa [#allocation4], 1 }
 0x389   :  { %448 = vsyncpa [#allocation4 + $0x1], 1 }

</bundles_post_ra>
